<compile_context>
chip_gen: v6e
topology: v6e:2x2x1
jax: 0.10.0
libtpu: 0.0.40
codegen_flags: <defaults>
</compile_context>

<pallas_src>
import functools

import jax
import jax.numpy as jnp
from jax import lax
from jax.experimental import pallas as pl
from jax.experimental.pallas import tpu as pltpu

IN_EPS = 1e-5
VMEM_LIMIT_BYTES = 48 * 1024 * 1024


# --------------------------- Pallas kernels ---------------------------------

def _matmul_bias_kernel(p_ref, w_ref, b_ref, o_ref, acc_ref):
    """out = patches @ W + b, tiled over (M, N, K) with f32 accumulation."""
    @pl.when(pl.program_id(2) == 0)
    def _init():
        acc_ref[...] = jnp.zeros_like(acc_ref)

    acc_ref[...] += jnp.dot(p_ref[...], w_ref[...],
                            preferred_element_type=jnp.float32)

    @pl.when(pl.program_id(2) == pl.num_programs(2) - 1)
    def _finalize():
        o_ref[...] = acc_ref[...] + b_ref[...]


def _inorm_kernel(x_ref, o_ref, *, relu):
    """InstanceNorm (affine=False, biased var) over the spatial axis, optional ReLU."""
    x = x_ref[...]                                   # (1, S, tc) f32
    mean = jnp.mean(x, axis=1, keepdims=True)
    var = jnp.mean(jnp.square(x - mean), axis=1, keepdims=True)
    y = (x - mean) * lax.rsqrt(var + IN_EPS)
    if relu:
        y = jnp.maximum(y, 0.0)
    o_ref[...] = y


def _inorm_residual_kernel(x_ref, r_ref, o_ref):
    """out = residual + InstanceNorm(x)  (second conv of a ResidualBlock, no activ)."""
    x = x_ref[...]
    mean = jnp.mean(x, axis=1, keepdims=True)
    var = jnp.mean(jnp.square(x - mean), axis=1, keepdims=True)
    o_ref[...] = r_ref[...] + (x - mean) * lax.rsqrt(var + IN_EPS)


# ------------------------------ wrappers -------------------------------------

def _round_up(x, m):
    return ((x + m - 1) // m) * m


def _im2col(x_nhwc, k, stride, pad):
    """(N,H,W,C) -> (N*OH*OW, k*k*C) patches, reflect padding, (kh,kw,cin) ordering."""
    xp = jnp.pad(x_nhwc, ((0, 0), (pad, pad), (pad, pad), (0, 0)), mode="reflect")
    n, h, w, c = xp.shape
    oh = (h - k) // stride + 1
    ow = (w - k) // stride + 1
    cols = []
    for i in range(k):
        for j in range(k):
            cols.append(xp[:, i:i + stride * oh:stride, j:j + stride * ow:stride, :])
    p = jnp.stack(cols, axis=3)                      # (N, OH, OW, k*k, C)
    return p.reshape(n * oh * ow, k * k * c), oh, ow


def _pallas_conv_matmul(patches, w2d, bias, tm, tn, tk):
    mp, kp = patches.shape
    _, np_ = w2d.shape
    grid = (mp // tm, np_ // tn, kp // tk)
    flops = 2 * mp * kp * np_
    bytes_accessed = patches.size * 2 + w2d.size * 2 + bias.size * 4 + mp * np_ * 4
    return pl.pallas_call(
        _matmul_bias_kernel,
        out_shape=jax.ShapeDtypeStruct((mp, np_), jnp.float32),
        grid=grid,
        in_specs=[
            pl.BlockSpec((tm, tk), lambda i, j, k: (i, k)),
            pl.BlockSpec((tk, tn), lambda i, j, k: (k, j)),
            pl.BlockSpec((1, tn), lambda i, j, k: (0, j)),
        ],
        out_specs=pl.BlockSpec((tm, tn), lambda i, j, k: (i, j)),
        scratch_shapes=[pltpu.VMEM((tm, tn), jnp.float32)],
        compiler_params=pltpu.CompilerParams(
            dimension_semantics=("parallel", "parallel", "arbitrary"),
            vmem_limit_bytes=VMEM_LIMIT_BYTES,
        ),
        cost_estimate=pl.CostEstimate(
            flops=flops, transcendentals=0, bytes_accessed=bytes_accessed),
    )(patches, w2d, bias)


def _conv2d_bias(x_nhwc, w_hwio, b, stride, pad):
    """Reflect-padded conv via im2col + tiled Pallas matmul.  Returns NHWC f32."""
    n = x_nhwc.shape[0]
    k, _, cin, cout = w_hwio.shape
    patches, oh, ow = _im2col(x_nhwc.astype(jnp.bfloat16), k, stride, pad)
    m, kk = patches.shape

    tm = min(256, _round_up(m, 16))          # bf16 sublane packing -> multiple of 16
    tn = min(256, _round_up(cout, 128))      # lane-dense output (>=128, 256 on v6e/v7x)
    tk = min(512, _round_up(kk, 128))
    mp, kp, np_ = _round_up(m, tm), _round_up(kk, tk), _round_up(cout, tn)

    p_pad = jnp.zeros((mp, kp), jnp.bfloat16).at[:m, :kk].set(patches)
    w_pad = jnp.zeros((kp, np_), jnp.bfloat16).at[:kk, :cout].set(
        w_hwio.reshape(kk, cout).astype(jnp.bfloat16))
    b_pad = jnp.zeros((1, np_), jnp.float32).at[:, :cout].set(b.reshape(1, cout))

    y = _pallas_conv_matmul(p_pad, w_pad, b_pad, tm, tn, tk)       # (Mp, Np) f32
    return y[:m, :cout].reshape(n, oh, ow, cout)


def _instance_norm_act(y_nhwc, *, relu, residual=None):
    """InstanceNorm(+ReLU | +residual) as a Pallas kernel over (batch, channel blocks)."""
    n, oh, ow, c = y_nhwc.shape
    s = oh * ow
    x3 = y_nhwc.reshape(n, s, c)
    tc = 128 if c % 128 == 0 else c
    grid = (n, c // tc)
    spec = pl.BlockSpec((1, s, tc), lambda b, cb: (b, 0, cb))

    if residual is None:
        kernel = functools.partial(_inorm_kernel, relu=relu)
        in_specs = [spec]
        args = (x3,)
    else:
        kernel = _inorm_residual_kernel
        in_specs = [spec, pl.BlockSpec((1, s, tc), lambda b, cb: (b, 0, cb))]
        args = (x3, residual.reshape(n, s, c))

    out = pl.pallas_call(
        kernel,
        out_shape=jax.ShapeDtypeStruct((n, s, c), jnp.float32),
        grid=grid,
        in_specs=in_specs,
        out_specs=pl.BlockSpec((1, s, tc), lambda b, cb: (b, 0, cb)),
        compiler_params=pltpu.CompilerParams(
            dimension_semantics=("parallel", "parallel"),
            vmem_limit_bytes=VMEM_LIMIT_BYTES,
        ),
    )(*args)
    return out.reshape(n, oh, ow, c)


# ------------------------------ parameters ------------------------------------

def _conv_init(key, cin, cout, k):
    kw_, kb_ = jax.random.split(key)
    w = 0.05 * jax.random.normal(kw_, (k, k, cin, cout), jnp.float32)   # HWIO
    b = 0.05 * jax.random.normal(kb_, (cout,), jnp.float32)
    return {"w": w, "b": b}


def make_encoder_params(key, base_ch=64, num_down=2, num_residual=2):
    """Synthetic params matching Encoder.__init__ shapes (conv0 hard-codes 1->64)."""
    params = []
    key, k0 = jax.random.split(key)
    params.append(dict(type="conv", stride=1, pad=3, **_conv_init(k0, 1, 64, 7)))
    ch = base_ch                       # must be 64 for the chain, as in the module
    for _ in range(num_down):
        key, kd = jax.random.split(key)
        params.append(dict(type="conv", stride=2, pad=1, **_conv_init(kd, ch, ch * 2, 4)))
        ch *= 2
    for _ in range(num_residual):
        key, k1, k2 = jax.random.split(key, 3)
        c1, c2 = _conv_init(k1, ch, ch, 3), _conv_init(k2, ch, ch, 3)
        params.append(dict(type="res", w1=c1["w"], b1=c1["b"], w2=c2["w"], b2=c2["b"]))
    return params


# ------------------------------ forward ---------------------------------------

def encoder_forward(x_nchw, params):
    """Pallas Encoder forward.  Input NCHW; returns (x, sides[::-1]) in NCHW."""
    x = jnp.transpose(x_nchw, (0, 2, 3, 1)).astype(jnp.float32)    # -> NHWC
    sides = []
    for p in params:
        if p["type"] == "conv":
            y = _conv2d_bias(x, p["w"], p["b"], p["stride"], p["pad"])
            x = _instance_norm_act(y, relu=True)
        else:  # residual block
            h = _conv2d_bias(x, p["w1"], p["b1"], 1, 1)
            h = _instance_norm_act(h, relu=True)
            h = _conv2d_bias(h, p["w2"], p["b2"], 1, 1)
            x = _instance_norm_act(h, relu=False, residual=x)
        sides.append(x)
    to_nchw = lambda t: jnp.transpose(t, (0, 3, 1, 2))
    return to_nchw(x), [to_nchw(s) for s in sides[::-1]]


# ------------------------- pure-JAX reference ----------------------------------

def _ref_conv(x_nhwc, w_hwio, b, stride, pad):
    xp = jnp.pad(x_nhwc, ((0, 0), (pad, pad), (pad, pad), (0, 0)), mode="reflect")
    y = lax.conv_general_dilated(
        xp.astype(jnp.bfloat16), w_hwio.astype(jnp.bfloat16),
        (stride, stride), "VALID",
        dimension_numbers=("NHWC", "HWIO", "NHWC"),
        preferred_element_type=jnp.float32)
    return y + b.reshape(1, 1, 1, -1)


def _ref_in(y, relu):
    mean = jnp.mean(y, axis=(1, 2), keepdims=True)
    var = jnp.mean(jnp.square(y - mean), axis=(1, 2), keepdims=True)
    y = (y - mean) * lax.rsqrt(var + IN_EPS)
    return jnp.maximum(y, 0.0) if relu else y


def reference_forward(x_nchw, params):
    x = jnp.transpose(x_nchw, (0, 2, 3, 1)).astype(jnp.float32)
    sides = []
    for p in params:
        if p["type"] == "conv":
            x = _ref_in(_ref_conv(x, p["w"], p["b"], p["stride"], p["pad"]), relu=True)
        else:
            h = _ref_in(_ref_conv(x, p["w1"], p["b1"], 1, 1), relu=True)
            x = x + _ref_in(_ref_conv(h, p["w2"], p["b2"], 1, 1), relu=False)
        sides.append(x)
    to_nchw = lambda t: jnp.transpose(t, (0, 3, 1, 2))
    return to_nchw(x), [to_nchw(s) for s in sides[::-1]]


# ------------------------------ main -------------------------------------------

if __name__ == "__main__":
    key = jax.random.PRNGKey(0)
    kx, kp = jax.random.split(key)

    base_ch, num_down, num_residual = 64, 2, 2
    # conv0 in the reference module hard-codes in_channels=1 -> out_channels=64.
    x = jax.random.normal(kx, (2, 1, 16, 16), jnp.float32)          # NCHW
    params = make_encoder_params(kp, base_ch=base_ch,
                                 num_down=num_down, num_residual=num_residual)

    out, sides = encoder_forward(x, params)
    out = jax.block_until_ready(out)
    sides = [jax.block_until_ready(s) for s in sides]

    ref_out, ref_sides = reference_forward(x, params)
    ref_out = jax.block_until_ready(ref_out)

    assert out.shape == ref_out.shape == (2, 4 * base_ch, 4, 4), out.shape
    assert len(sides) == len(ref_sides) == num_down + 1 + num_residual

    def _close(a, b):
        return bool(jnp.allclose(a, b, rtol=2e-2, atol=2e-2))

    assert _close(out, ref_out), float(jnp.max(jnp.abs(out - ref_out)))
    for s, rs in zip(sides, ref_sides):
        assert s.shape == rs.shape, (s.shape, rs.shape)
        assert _close(s, rs), float(jnp.max(jnp.abs(s - rs)))

    print("KERNEL_OK")
</pallas_src>

<mosaic_0001>
module attributes {stable_mosaic.version = 11 : i64} {
  func.func @_matmul_bias_kernel(%arg0: i32, %arg1: i32, %arg2: i32, %arg3: memref<256x128xbf16, #tpu.memory_space<vmem>>, %arg4: memref<128x128xbf16, #tpu.memory_space<vmem>>, %arg5: memref<1x128xf32, #tpu.memory_space<vmem>>, %arg6: memref<256x128xf32, #tpu.memory_space<vmem>>, %arg7: memref<256x128xf32, #tpu.memory_space<vmem>>) attributes {dimension_semantics = [#tpu.dimension_semantics<parallel>, #tpu.dimension_semantics<parallel>, #tpu.dimension_semantics<arbitrary>], iteration_bounds = array<i64: 2, 1, 1>, scalar_prefetch = 0 : i64, scratch_operands = 1 : i64, tpu.core_type = #tpu.core_type<tc>, window_params = [{transform_indices = @transform_0, window_bounds = array<i64: 256, 128>}, {transform_indices = @transform_1, window_bounds = array<i64: 128, 128>}, {transform_indices = @transform_2, window_bounds = array<i64: 1, 128>}, {transform_indices = @transform_3, window_bounds = array<i64: 256, 128>}]} {
    %c0_i32 = arith.constant 0 : i32
    %0 = arith.cmpi eq, %arg2, %c0_i32 : i32
    %1 = arith.extui %0 : i1 to i32
    %c0_i32_0 = arith.constant 0 : i32
    %2 = arith.cmpi ne, %1, %c0_i32_0 : i32
    scf.if %2 {
      %cst_10 = arith.constant 0.000000e+00 : f32
      %12 = vector.broadcast %cst_10 : f32 to vector<256x128xf32>
      %c0_11 = arith.constant 0 : index
      %c0_12 = arith.constant 0 : index
      %13 = vector.load %arg7[%c0_11, %c0_12] : memref<256x128xf32, #tpu.memory_space<vmem>>, vector<256x128xf32>
      tpu.vector_store %arg7[%c0_11, %c0_12], %12 {strides = array<i32>} : memref<256x128xf32, #tpu.memory_space<vmem>>, vector<256x128xf32>,
    } else {
    }
    %c0 = arith.constant 0 : index
    %c0_1 = arith.constant 0 : index
    %3 = vector.load %arg7[%c0, %c0_1] : memref<256x128xf32, #tpu.memory_space<vmem>>, vector<256x128xf32>
    %c0_2 = arith.constant 0 : index
    %c0_3 = arith.constant 0 : index
    %4 = vector.load %arg3[%c0_2, %c0_3] : memref<256x128xbf16, #tpu.memory_space<vmem>>, vector<256x128xbf16>
    %c0_4 = arith.constant 0 : index
    %c0_5 = arith.constant 0 : index
    %5 = vector.load %arg4[%c0_4, %c0_5] : memref<128x128xbf16, #tpu.memory_space<vmem>>, vector<128x128xbf16>
    %cst = arith.constant dense<0.000000e+00> : vector<256x128xf32>
    %6 = tpu.matmul %4, %5, %cst {dimension_numbers = #tpu.dot_dimension_numbers<[1], [0], [0], [1], [0, 0, 1, 1], [], []>} : vector<256x128xbf16>, vector<128x128xbf16>, vector<256x128xf32> -> vector<256x128xf32>
    %7 = arith.addf %3, %6 : vector<256x128xf32>
    %c0_6 = arith.constant 0 : index
    %c0_7 = arith.constant 0 : index
    %8 = vector.load %arg7[%c0_6, %c0_7] : memref<256x128xf32, #tpu.memory_space<vmem>>, vector<256x128xf32>
    tpu.vector_store %arg7[%c0_6, %c0_7], %7 {strides = array<i32>} : memref<256x128xf32, #tpu.memory_space<vmem>>, vector<256x128xf32>,
    %c0_i32_8 = arith.constant 0 : i32
    %9 = arith.cmpi eq, %arg2, %c0_i32_8 : i32
    %10 = arith.extui %9 : i1 to i32
    %c0_i32_9 = arith.constant 0 : i32
    %11 = arith.cmpi ne, %10, %c0_i32_9 : i32
    scf.if %11 {
      %c0_10 = arith.constant 0 : index
      %c0_11 = arith.constant 0 : index
      %12 = vector.load %arg7[%c0_10, %c0_11] : memref<256x128xf32, #tpu.memory_space<vmem>>, vector<256x128xf32>
      %c0_12 = arith.constant 0 : index
      %c0_13 = arith.constant 0 : index
      %13 = vector.load %arg5[%c0_12, %c0_13] : memref<1x128xf32, #tpu.memory_space<vmem>>, vector<1x128xf32>
      %14 = vector.broadcast %13 : vector<1x128xf32> to vector<256x128xf32>
      %15 = arith.addf %12, %14 : vector<256x128xf32>
      %c0_14 = arith.constant 0 : index
      %c0_15 = arith.constant 0 : index
      %16 = vector.load %arg6[%c0_14, %c0_15] : memref<256x128xf32, #tpu.memory_space<vmem>>, vector<256x128xf32>
      tpu.vector_store %arg6[%c0_14, %c0_15], %15 {strides = array<i32>} : memref<256x128xf32, #tpu.memory_space<vmem>>, vector<256x128xf32>,
    } else {
    }
    return
  }
  func.func @transform_0(%arg0: i32, %arg1: i32, %arg2: i32) -> (i32, i32) {
    %c0_i32 = arith.constant 0 : i32
    return %arg0, %arg2 : i32, i32
  }
  func.func @transform_1(%arg0: i32, %arg1: i32, %arg2: i32) -> (i32, i32) {
    %c0_i32 = arith.constant 0 : i32
    return %arg2, %arg1 : i32, i32
  }
  func.func @transform_2(%arg0: i32, %arg1: i32, %arg2: i32) -> (i32, i32) {
    %c0_i32 = arith.constant 0 : i32
    %c0_i32_0 = arith.constant 0 : i32
    return %c0_i32, %arg1 : i32, i32
  }
  func.func @transform_3(%arg0: i32, %arg1: i32, %arg2: i32) -> (i32, i32) {
    %c0_i32 = arith.constant 0 : i32
    return %arg0, %arg1 : i32, i32
  }
}

</mosaic_0001>

<bundles_post_ra>
// kernel: tpu_custom_call.1
= control target key start
LH: loop header
LB: loop body
LE: loop exit
PB: predicated region body
PF: predicated region fallthrough
CT: control target
= control target key end

     0   :  { %8 = vsyncpa [#allocation4], 0  ;;  %s1656_s0 = inlined_call_operand.hbm [shape: bf16[512,128], index: 0, kind: input, shape index: {}]   ;;  %s1657_s1 = inlined_call_operand.hbm [shape: bf16[128,128], index: 1, kind: input, shape index: {}]   ;;  %s1658_s2 = inlined_call_operand.vmem [shape: f32[1,128], index: 2, kind: input, shape index: {}]   ;;  %s1659_s3 = inlined_call_operand.hbm [shape: f32[512,128], index: 3, kind: output, shape index: {}]  }
   0x1   :  { %10 = vsyncpa [#allocation4 + $0x1], 0 }
   0x2   :  { %11 = vsyncpa [#allocation7], 0 }
   0x3   :  { %12 = vsyncpa [#allocation5], 0 }
   0x4   :  { %14 = vsyncpa [#allocation5 + $0x1], 0  ;;  %s1378_s12 = smov 0   ;;  %s1380_s13 = smov 0  }
   0x5   :  { %s1382_s14 = smov 0   ;;  %s1384_s15 = smov 0  }
   0x6   :  { %s1386_s16 = smov 0   ;;  %s1388_s17 = smov 0  }
   0x7 LB: > { %s977_s18 = sadd.s32 4294967295, %s1349_s17   ;;  %s978_s19 = sadd.s32 4294967294, %s1349_s17   ;;  %s1349_s17 = sphi %s1388_s17, %s20_s17   ;;  %s1345_s16 = sphi %s1386_s16, %s1681_s16   ;;  %s1341_s15 = sphi %s1384_s15, %s1680_s15   ;;  %s1337_s14 = sphi %s1382_s14, %s1679_s14   ;;  %s1333_s13 = sphi %s1380_s13, %s1678_s13   ;;  %s1329_s12 = sphi %s1378_s12, %s1677_s12  }
   0x8   : > { %p61_p0 = scmp.ne.s32.totalorder %s1333_s13, %s1329_s12  ;;  %p1412_p1 = scmp.eq.s32.totalorder %s977_s18, 0 }
   0x9   : > { %p1416_p2 = scmp.eq.s32.totalorder %s977_s18, 1  ;;  %p147_p3 = scmp.eq.s32.totalorder %s978_s19, 1 }
   0xa   : > { %p1422_p4 = por %p1412_p1, %p61_p0  ;;  %p979_p5 = scmp.ge.s32.totalorder %s1349_s17, 1 }
   0xb   : > { %p1427_p6 = por %p147_p3, %p61_p0  ;;  %p154_p7 = scmp.lt.s32.totalorder %s1349_s17, 3 }
   0xc   : > { %s1665_s22 = scalar_select %p1422_p4, 1, 0 }
   0xd   : > { %s1666_s23 = scalar_select %p1427_p6, 1, 0 }
   0xe   : > { %p1432_p8 = pnand %p979_p5, %p154_p7  ;;  %s1351_s25 = smov [#allocation6]  }
   0xf   : > { %s170_s26 = sshll.u32 %s1351_s25, 4  ;;  %s39_s28 = sadd.s32 1, %s1345_s16  ;;  %s171_s26 = int_to_ptr.vmem [resolvable:$true] %s170_s26 }
  0x10   : > { %p1118_p9 = pneg %p1432_p8  ;;  %s1222_s29 = scalar_lea.vmem %s171_s26, 1024 }
  0x11   : > { %p1223_p13 = scmp.ne.s32.totalorder %s171_s26, %s1222_s29  ;;  %p1230_p5 = scmp.lt.s32.totalorder %s171_s26, %s171_s26 }
  0x12   : > { %p1441_p11 = pnand %p1118_p9, %p1412_p1  ;;  %p1231_p7 = scmp.lt.s32.totalorder %s1222_s29, %s1222_s29 }
  0x14   : > { %p1213_p12 = pneg %p1441_p11  ;;  %p1232_p6 = por %p1231_p7, %p1230_p5 }
  0x16   : > { %p1225_p0 = pnand %p1223_p13, %p1213_p12 }
  0x18   : > { %p1226_p3 = pneg %p1225_p0 }
  0x1a   : > { %p1233_p4 = pnand %p1232_p6, %p1226_p3 }
  0x1c   : > { %1236 = shalt.err (!%p1233_p4)
}
  0x1d   : > { %s1661_s30 = smov 64   ;;  %s1662_s4 = smov 4  }
  0x1e   : > { %1121 = dma.hbm_to_vmem [thread:$0]  (!%p1441_p11), %s1657_s1, 1024, %s171_s26, [#allocation7], %s1661_s30, %s1661_s30, %s1662_s4  }
  0x1f   : > { %p41_p4 = scmp.ge.s32.totalorder %s39_s28, 2  ;;  %s48_s7 = sadd.s32 1, %s1337_s14 }
  0x20   : > { %p55_p6 = scmp.ne.s32.totalorder %s1337_s14, %s1333_s13  ;;  %p56_p9 = scmp.eq.s32.totalorder %s1349_s17, 0 }
  0x21   : > { %s1683_s28 = smov (%p41_p4, %s39_s28), 0  ;;  %p1131_p0 = scmp.lt.s32.totalorder %s1349_s17, 2 }
  0x22   : > { %p1462_p12 = por %p56_p9, %p55_p6  ;;  %p1468_p13 = por %p1416_p2, %p55_p6 }
  0x23   : > { %s43_s10 = ssub.s32 %s1345_s16, %s1683_s28  ;;  %s190_s11 = sand.u32 1, %s1337_s14  }
  0x24   : > { %p46_p11 = scmp.eq.s32.totalorder %s43_s10, 0  ;;  %s983_s18 = sshll.u32 %s190_s11, 7 }
  0x25   : > { %s1020_s25 = sshll.u32 %s1345_s16, 11  ;;  %s194_s5 = scalar_lea.vmem [#allocation3], %s983_s18 }
  0x26   : > { %s1477_s19 = scalar_select %p46_p11, %s1337_s14, %s48_s7  }
  0x27   : > { %s201_s29 = scalar_lea.hbm %s1656_s0, %s1020_s25  ;;  %s202_s6 = sshll.u32 %s194_s5, 4  ;;  %s203_s6 = int_to_ptr.vmem [resolvable:$true] %s202_s6 }
  0x28   : > { %p1485_p2 = pnand %p1131_p0, %p1462_p12  ;;  %s191_s30 = scalar_lea.sflag [#allocation4], %s190_s11 }
  0x29   : > { %s1250_s10 = scalar_lea.vmem %s203_s6, 2048  ;;  %s1354_s7 = smov [#allocation3]  }
  0x2a   : > { %p1239_p3 = pneg %p1485_p2  ;;  %p1251_p5 = scmp.ne.s32.totalorder %s203_s6, %s1250_s10 }
  0x2b   : > { %s1255_s4 = sshll.u32 %s1354_s7, 4  ;;  %s1256_s4 = int_to_ptr.vmem [resolvable:$false] %s1255_s4 }
  0x2c   : > { %p1253_p7 = pnand %p1251_p5, %p1239_p3  ;;  %s1257_s25 = scalar_lea.vmem %s1256_s4, 4096 }
  0x2d   : > { %p1258_p6 = scmp.lt.s32.totalorder %s203_s6, %s1256_s4  ;;  %p1259_p9 = scmp.lt.s32.totalorder %s1257_s25, %s1250_s10 }
  0x2e   : > { %p1254_p4 = pneg %p1253_p7 }
  0x2f   : > { %p1260_p11 = por %p1259_p9, %p1258_p6 }
  0x31   : > { %p1261_p10 = pnand %p1260_p11, %p1254_p4 }
  0x33   : > { %1264 = shalt.err (!%p1261_p10)
}
  0x34   : > { %s1672_s8 = smov 4   ;;  %s1673_s18 = smov 64  }
  0x35   : > { %1125 = dma.hbm_to_vmem [thread:$0]  (!%p1485_p2), %s201_s29, 2048, %s203_s6, %s191_s30, %s1673_s18, %s1673_s18, %s1672_s8  }
  0x36   : > { %214 = sbr.rel (%p1432_p8) target bundleno = 334 (0x14e), region = 32  ;;  %s1499_s11 = sand.u32 (!%p1432_p8), 1, %s1333_s13  }
  0x37   : > { %s987_s4 = sshll.u32 (!%p1432_p8), %s1499_s11, 7  ;;  %s217_s26 = scalar_lea.sflag (!%p1432_p8), [#allocation4], %s1499_s11 }
  0x38   : > { %s1503_s27 = scalar_lea.vmem (!%p1432_p8), [#allocation3], %s987_s4  ;;  %p1674_p10 = scmp.ne.s32.totalorder (!%p1432_p8), %s1665_s22, 0 }
  0x3b   : > { %1316 = dma.done.wait (%p1674_p10), %s217_s26, 2048  }
  0x3c   : > { %1318 = vsyncadd (%p1674_p10), %s217_s26, 4294965248 }
  0x3d   : > { %1320 = dma.done.wait (%p1412_p1), [#allocation7], 1024  }
  0x3e   : > { %1322 = vsyncadd (%p1412_p1), [#allocation7], 4294966272  ;;  %v1187_v0 = vld [vmem:[#allocation6 + $0x38] sm:$0xff]   ;;  %v1188_v1 = vld [vmem:[#allocation6 + $0x30] sm:$0xff]   ;;  %s989_s20 = sshll.u32 %s1499_s11, 8  ;;  %s1021_s29 = sshll.u32 %s1341_s15, 12 }
  0x3f   : > { %1046 = vmatprep.subr.bf16.mxu0 %v1187_v0  ;;  %1094 = vmatprep.subr.bf16.mxu1 %v1187_v0  ;;  %v1189_v2 = vld [vmem:[#allocation6 + $0x28] sm:$0xff]   ;;  %v1190_v3 = vld [vmem:[#allocation6 + $0x20] sm:$0xff]   ;;  %v1191_v6 = vld [vmem:[#allocation6 + $0x18] sm:$0xff]   ;;  %s1537_s30 = scalar_lea.vmem [#allocation8], %s989_s20  ;;  %s1600_s10 = scalar_lea.hbm %s1659_s3, %s1021_s29 }
  0x40   : > { %1047 = vmatpush3.bf16.msra.mxu0 %v1187_v0  ;;  %1102 = vmatpush3.bf16.msra.mxu1 %v1187_v0  ;;  %v1195_v4 = vld [vmem:[%s1503_s27] sm:$0xff]   ;;  %v1192_v7 = vld [vmem:[#allocation6 + $0x10] sm:$0xff]   ;;  %v1193_v8 = vld [vmem:[#allocation6 + $0x8] sm:$0xff]   ;;  %s863_s5 = sshll.u32 %s1537_s30, 4  ;;  %s849_s15 = scalar_lea.sflag [#allocation5], %s1499_s11  ;;  %s1602_s5 = int_to_ptr.vmem [resolvable:$true] %s863_s5 }
  0x41   : > { %1048 = vmatprep.subr.bf16.mxu0 %v1188_v1  ;;  %1095 = vmatprep.subr.bf16.mxu1 %v1188_v1  ;;  %v1196_v5 = vld [vmem:[%s1503_s27 + $0x40] sm:$0xff]   ;;  %v1197_v10 = vld [vmem:[%s1503_s27 + $0x8] sm:$0xff]   ;;  %v1199_v12 = vld [vmem:[%s1503_s27 + $0x10] sm:$0xff]   ;;  %s1265_s7 = scalar_lea.vmem %s1602_s5, 4096  ;;  %s1355_s25 = smov [#allocation8]  }
  0x42   : > { %1062 = vmatprep.mubr.bf16.mxu0 %v1195_v4  ;;  %1078 = vmatprep.mubr.bf16.mxu1 %v1196_v5  ;;  %v1194_v9 = vld [vmem:[#allocation6] sm:$0xff]   ;;  %v1198_v11 = vld [vmem:[%s1503_s27 + $0x48] sm:$0xff]   ;;  %v1200_v13 = vld [vmem:[%s1503_s27 + $0x50] sm:$0xff]   ;;  %p1266_p1 = scmp.ne.s32.totalorder %s1602_s5, %s1265_s7  ;;  %s1269_s8 = sshll.u32 %s1355_s25, 4  ;;  %s1270_s8 = int_to_ptr.vmem [resolvable:$false] %s1269_s8 }
  0x43   : > { %v1201_v14 = vld [vmem:[%s1503_s27 + $0x18] sm:$0xff]   ;;  %v1203_v16 = vld [vmem:[%s1503_s27 + $0x20] sm:$0xff]   ;;  %v1205_v18 = vld [vmem:[%s1503_s27 + $0x28] sm:$0xff]   ;;  %s1271_s18 = scalar_lea.vmem %s1270_s8, 8192  ;;  %p1272_p0 = scmp.lt.s32.totalorder %s1602_s5, %s1270_s8 }
  0x44   : > { %1049 = vmatpush3.bf16.msra.mxu0 %v1188_v1  ;;  %1103 = vmatpush3.bf16.msra.mxu1 %v1188_v1  ;;  %v1202_v15 = vld [vmem:[%s1503_s27 + $0x58] sm:$0xff]   ;;  %v1204_v17 = vld [vmem:[%s1503_s27 + $0x60] sm:$0xff]   ;;  %v1206_v19 = vld [vmem:[%s1503_s27 + $0x68] sm:$0xff]   ;;  %p1267_p8 = pnand %p1266_p1, %p1468_p13  ;;  %p1273_p2 = scmp.lt.s32.totalorder %s1271_s18, %s1265_s7 }
  0x45   : > { %1050 = vmatprep.subr.bf16.mxu0 %v1189_v2  ;;  %1096 = vmatprep.subr.bf16.mxu1 %v1189_v2  ;;  %v1207_v20 = vld [vmem:[%s1503_s27 + $0x30] sm:$0xff]   ;;  %v1209_v22 = vld [vmem:[%s1503_s27 + $0x38] sm:$0xff]   ;;  %v1533_v24 = vld [vmem:[%s1658_s2] ss:$0 sm:$0xff] }
  0x46   : > { %v1208_v21 = vld [vmem:[%s1503_s27 + $0x70] sm:$0xff]   ;;  %v1210_v23 = vld [vmem:[%s1503_s27 + $0x78] sm:$0xff]   ;;  %p1268_p12 = pneg %p1267_p8  ;;  %p1274_p3 = por %p1273_p2, %p1272_p0 }
  0x48   : > { %1051 = vmatpush3.bf16.msra.mxu0 %v1189_v2  ;;  %1104 = vmatpush3.bf16.msra.mxu1 %v1189_v2  ;;  %p1275_p5 = pnand %p1274_p3, %p1268_p12 }
  0x49   : > { %1052 = vmatprep.subr.bf16.mxu0 %v1190_v3  ;;  %1097 = vmatprep.subr.bf16.mxu1 %v1190_v3 }
  0x4c   : > { %1053 = vmatpush3.bf16.msra.mxu0 %v1190_v3  ;;  %1105 = vmatpush3.bf16.msra.mxu1 %v1190_v3 }
  0x4d   : > { %1054 = vmatprep.subr.bf16.mxu0 %v1191_v6  ;;  %1098 = vmatprep.subr.bf16.mxu1 %v1191_v6 }
  0x50   : > { %1055 = vmatpush3.bf16.msra.mxu0 %v1191_v6  ;;  %1106 = vmatpush3.bf16.msra.mxu1 %v1191_v6 }
  0x51   : > { %1056 = vmatprep.subr.bf16.mxu0 %v1192_v7  ;;  %1099 = vmatprep.subr.bf16.mxu1 %v1192_v7 }
  0x54   : > { %1057 = vmatpush3.bf16.msra.mxu0 %v1192_v7  ;;  %1107 = vmatpush3.bf16.msra.mxu1 %v1192_v7 }
  0x55   : > { %1058 = vmatprep.subr.bf16.mxu0 %v1193_v8  ;;  %1100 = vmatprep.subr.bf16.mxu1 %v1193_v8 }
  0x58   : > { %1059 = vmatpush3.bf16.msra.mxu0 %v1193_v8  ;;  %1108 = vmatpush3.bf16.msra.mxu1 %v1193_v8 }
  0x59   : > { %1060 = vmatprep.subr.bf16.mxu0 %v1194_v9  ;;  %1101 = vmatprep.subr.bf16.mxu1 %v1194_v9 }
  0x5c   : > { %1061 = vmatpush3.bf16.msra.mxu0 %v1194_v9  ;;  %1109 = vmatpush3.bf16.msra.mxu1 %v1194_v9 }
  0x5f   : > { %1063 = vmatmul.mubr.bf16.vlgmr.msra.gmra.mxu0 %v1197_v10  ;;  %1079 = vmatmul.mubr.bf16.vlgmr.msra.gmra.mxu1 %v1198_v11 }
  0x60   : > { %1066 = vmatprep.mubr.bf16.mxu0 %v1199_v12  ;;  %1082 = vmatprep.mubr.bf16.mxu1 %v1200_v13 }
  0x67   : > { %1067 = vmatmul.mubr.bf16.gmra.mxu0 %v1201_v14  ;;  %1083 = vmatmul.mubr.bf16.gmra.mxu1 %v1202_v15 }
  0x68   : > { %1070 = vmatprep.mubr.bf16.mxu0 %v1203_v16  ;;  %1086 = vmatprep.mubr.bf16.mxu1 %v1204_v17 }
  0x6f   : > { %1071 = vmatmul.mubr.bf16.gmra.mxu0 %v1205_v18  ;;  %1087 = vmatmul.mubr.bf16.gmra.mxu1 %v1206_v19 }
  0x70   : > { %1074 = vmatprep.mubr.bf16.mxu0 %v1207_v20  ;;  %1090 = vmatprep.mubr.bf16.mxu1 %v1208_v21 }
  0x77   : > { %1075 = vmatmul.mubr.bf16.gmra.mxu0 %v1209_v22  ;;  %1091 = vmatmul.mubr.bf16.gmra.mxu1 %v1210_v23 }
 0x11f   : > { %v1064_v25 = vpop.f32.mrf.mxu0  ;;  %v1080_v26 = vpop.f32.mrf.mxu1 }
 0x120   : > { %v786_v27 = vadd.f32 %v1064_v25, %v1533_v24  ;;  %v802_v28 = vadd.f32 %v1080_v26, %v1533_v24 }
 0x121   : > { %v551_v29 = vpop.f32.mrf.mxu0  ;;  %v615_v30 = vpop.f32.mrf.mxu1 }
 0x122   : > { %818 = vst [vmem:[%s1537_s30 + $0x10] sm:$0xff] %v786_v27  ;;  %834 = vst [vmem:[%s1537_s30 + $0x90] sm:$0xff] %v802_v28  ;;  %v784_v31 = vadd.f32 %v1533_v24, %v551_v29  ;;  %v800_v32 = vadd.f32 %v1533_v24, %v615_v30 }
 0x123   : > { %v1065_v33 = vpop.f32.mrf.mxu0  ;;  %v1081_v34 = vpop.f32.mrf.mxu1 }
 0x124   : > { %816 = vst [vmem:[%s1537_s30] sm:$0xff] %v784_v31  ;;  %832 = vst [vmem:[%s1537_s30 + $0x80] sm:$0xff] %v800_v32  ;;  %v787_v35 = vadd.f32 %v1065_v33, %v1533_v24  ;;  %v803_v36 = vadd.f32 %v1081_v34, %v1533_v24 }
 0x125   : > { %v554_v37 = vpop.f32.mrf.mxu0  ;;  %v618_v38 = vpop.f32.mrf.mxu1 }
 0x126   : > { %819 = vst [vmem:[%s1537_s30 + $0x18] sm:$0xff] %v787_v35  ;;  %835 = vst [vmem:[%s1537_s30 + $0x98] sm:$0xff] %v803_v36  ;;  %v785_v39 = vadd.f32 %v1533_v24, %v554_v37  ;;  %v801_v40 = vadd.f32 %v1533_v24, %v618_v38 }
 0x127   : > { %v1068_v41 = vpop.f32.mrf.mxu0  ;;  %v1084_v42 = vpop.f32.mrf.mxu1 }
 0x128   : > { %817 = vst [vmem:[%s1537_s30 + $0x8] sm:$0xff] %v785_v39  ;;  %833 = vst [vmem:[%s1537_s30 + $0x88] sm:$0xff] %v801_v40  ;;  %v790_v43 = vadd.f32 %v1068_v41, %v1533_v24  ;;  %v806_v44 = vadd.f32 %v1084_v42, %v1533_v24 }
 0x129   : > { %v567_v45 = vpop.f32.mrf.mxu0  ;;  %v631_v46 = vpop.f32.mrf.mxu1 }
 0x12a   : > { %822 = vst [vmem:[%s1537_s30 + $0x30] sm:$0xff] %v790_v43  ;;  %838 = vst [vmem:[%s1537_s30 + $0xb0] sm:$0xff] %v806_v44  ;;  %v788_v47 = vadd.f32 %v1533_v24, %v567_v45  ;;  %v804_v48 = vadd.f32 %v1533_v24, %v631_v46 }
 0x12b   : > { %v1069_v49 = vpop.f32.mrf.mxu0  ;;  %v1085_v50 = vpop.f32.mrf.mxu1 }
 0x12c   : > { %820 = vst [vmem:[%s1537_s30 + $0x20] sm:$0xff] %v788_v47  ;;  %836 = vst [vmem:[%s1537_s30 + $0xa0] sm:$0xff] %v804_v48  ;;  %v791_v51 = vadd.f32 %v1069_v49, %v1533_v24  ;;  %v807_v52 = vadd.f32 %v1085_v50, %v1533_v24 }
 0x12d   : > { %v570_v53 = vpop.f32.mrf.mxu0  ;;  %v634_v54 = vpop.f32.mrf.mxu1 }
 0x12e   : > { %823 = vst [vmem:[%s1537_s30 + $0x38] sm:$0xff] %v791_v51  ;;  %839 = vst [vmem:[%s1537_s30 + $0xb8] sm:$0xff] %v807_v52  ;;  %v789_v55 = vadd.f32 %v1533_v24, %v570_v53  ;;  %v805_v56 = vadd.f32 %v1533_v24, %v634_v54 }
 0x12f   : > { %v1072_v57 = vpop.f32.mrf.mxu0  ;;  %v1088_v58 = vpop.f32.mrf.mxu1 }
 0x130   : > { %821 = vst [vmem:[%s1537_s30 + $0x28] sm:$0xff] %v789_v55  ;;  %837 = vst [vmem:[%s1537_s30 + $0xa8] sm:$0xff] %v805_v56  ;;  %v794_v59 = vadd.f32 %v1072_v57, %v1533_v24  ;;  %v810_v60 = vadd.f32 %v1088_v58, %v1533_v24 }
 0x131   : > { %v583_v61 = vpop.f32.mrf.mxu0  ;;  %v647_v62 = vpop.f32.mrf.mxu1 }
 0x132   : > { %826 = vst [vmem:[%s1537_s30 + $0x50] sm:$0xff] %v794_v59  ;;  %842 = vst [vmem:[%s1537_s30 + $0xd0] sm:$0xff] %v810_v60  ;;  %v792_v63 = vadd.f32 %v1533_v24, %v583_v61  ;;  %v808_v0 = vadd.f32 %v1533_v24, %v647_v62 }
 0x133   : > { %v1073_v1 = vpop.f32.mrf.mxu0  ;;  %v1089_v2 = vpop.f32.mrf.mxu1 }
 0x134   : > { %824 = vst [vmem:[%s1537_s30 + $0x40] sm:$0xff] %v792_v63  ;;  %840 = vst [vmem:[%s1537_s30 + $0xc0] sm:$0xff] %v808_v0  ;;  %v795_v3 = vadd.f32 %v1073_v1, %v1533_v24  ;;  %v811_v4 = vadd.f32 %v1089_v2, %v1533_v24 }
 0x135   : > { %v586_v5 = vpop.f32.mrf.mxu0  ;;  %v650_v6 = vpop.f32.mrf.mxu1 }
 0x136   : > { %827 = vst [vmem:[%s1537_s30 + $0x58] sm:$0xff] %v795_v3  ;;  %843 = vst [vmem:[%s1537_s30 + $0xd8] sm:$0xff] %v811_v4  ;;  %v793_v7 = vadd.f32 %v1533_v24, %v586_v5  ;;  %v809_v8 = vadd.f32 %v1533_v24, %v650_v6 }
 0x137   : > { %v1076_v9 = vpop.f32.mrf.mxu0  ;;  %v1092_v10 = vpop.f32.mrf.mxu1 }
 0x138   : > { %825 = vst [vmem:[%s1537_s30 + $0x48] sm:$0xff] %v793_v7  ;;  %841 = vst [vmem:[%s1537_s30 + $0xc8] sm:$0xff] %v809_v8  ;;  %v798_v11 = vadd.f32 %v1076_v9, %v1533_v24  ;;  %v814_v12 = vadd.f32 %v1092_v10, %v1533_v24 }
 0x139   : > { %v599_v13 = vpop.f32.mrf.mxu0  ;;  %v663_v14 = vpop.f32.mrf.mxu1 }
 0x13a   : > { %830 = vst [vmem:[%s1537_s30 + $0x70] sm:$0xff] %v798_v11  ;;  %846 = vst [vmem:[%s1537_s30 + $0xf0] sm:$0xff] %v814_v12  ;;  %v796_v15 = vadd.f32 %v1533_v24, %v599_v13  ;;  %v812_v16 = vadd.f32 %v1533_v24, %v663_v14 }
 0x13b   : > { %v1077_v17 = vpop.f32.mrf.mxu0  ;;  %v1093_v18 = vpop.f32.mrf.mxu1 }
 0x13c   : > { %828 = vst [vmem:[%s1537_s30 + $0x60] sm:$0xff] %v796_v15  ;;  %844 = vst [vmem:[%s1537_s30 + $0xe0] sm:$0xff] %v812_v16  ;;  %v799_v19 = vadd.f32 %v1077_v17, %v1533_v24  ;;  %v815_v20 = vadd.f32 %v1093_v18, %v1533_v24 }
 0x13d   : > { %v602_v21 = vpop.f32.mrf.mxu0  ;;  %v666_v22 = vpop.f32.mrf.mxu1 }
 0x13e   : > { %831 = vst [vmem:[%s1537_s30 + $0x78] sm:$0xff] %v799_v19  ;;  %847 = vst [vmem:[%s1537_s30 + $0xf8] sm:$0xff] %v815_v20  ;;  %v797_v23 = vadd.f32 %v1533_v24, %v602_v21  ;;  %v813_v25 = vadd.f32 %v1533_v24, %v666_v22 }
 0x140   : > { %829 = vst [vmem:[%s1537_s30 + $0x68] sm:$0xff] %v797_v23  ;;  %845 = vst [vmem:[%s1537_s30 + $0xe8] sm:$0xff] %v813_v25 }
 0x141   : > { %1278 = shalt.err (!%p1275_p5)
}
 0x142   : > { %s1279_s4 = scalar_lea.hbm %s1600_s10, 4096  ;;  %s1283_s20 = scalar_lea.hbm %s1659_s3, 8192 }
 0x143   : > { %p1280_p7 = scmp.ne.s32.totalorder %s1600_s10, %s1279_s4  ;;  %p1284_p9 = scmp.lt.s32.totalorder %s1600_s10, %s1659_s3 }
 0x144   : > { %p1285_p11 = scmp.lt.s32.totalorder %s1283_s20, %s1279_s4 }
 0x145   : > { %p1281_p4 = pnand %p1280_p7, %p1468_p13 }
 0x146   : > { %p1286_p10 = por %p1285_p11, %p1284_p9 }
 0x147   : > { %p1282_p6 = pneg %p1281_p4 }
 0x149   : > { %p1287_p1 = pnand %p1286_p10, %p1282_p6 }
 0x14b   : > { %1290 = shalt.err (!%p1287_p1)
}
 0x14c   : > { %s1356_s30 = smov 128   ;;  %s1357_s29 = smov 8  }
 0x14d   : > { %1116 = dma.vmem_to_hbm [thread:$0]  (%p1468_p13), %s1602_s5, 4096, %s1600_s10, %s849_s15, %s1356_s30, %s1356_s30, %s1357_s29  }
 0x14e PF: > { %s878_s6 = sand.u32 1, %s1329_s12   ;;  %p1675_p8 = scmp.ne.s32.totalorder %s1666_s23, 0 }
 0x14f   : > { %p1676_p12 = scmp.ge.s32.totalorder %s1349_s17, 2  ;;  %s879_s21 = scalar_lea.sflag [#allocation5], %s878_s6 }
 0x151   : > { %p1127_p0 = pnand %p1676_p12, %p1675_p8 }
 0x153   : > { %p1128_p2 = pneg %p1127_p0 }
 0x155   : > { %1324 = dma.done.wait (%p1128_p2), %s879_s21, 4096  }
 0x156   : > { %1326 = vsyncadd (%p1128_p2), %s879_s21, 4294963200  ;;  %s20_s17 = sadd.s32 1, %s1349_s17   ;;  %s1677_s12 = smov %s1333_s13 }
 0x157   : > { %p17_p3 = scmp.ge.s32.totalorder %s20_s17, 4   ;;  %s1678_s13 = smov %s1337_s14 }
 0x158   : > { %s1679_s14 = smov %s1477_s19  ;;  %s1680_s15 = smov %s1345_s16 }
 0x159   : > { %s1681_s16 = smov %s1683_s28  ;;  %19 = sbr.rel (!%p17_p3) target bundleno = 7 (0x7), region = 93 }
 0x15e   :  { %884 = vsyncpa [#allocation4], 1 }
 0x15f   :  { %886 = vsyncpa [#allocation4 + $0x1], 1 }
 0x160   :  { %887 = vsyncpa [#allocation7], 1 }
 0x161   :  { %888 = vsyncpa [#allocation5], 1 }
 0x162   :  { %890 = vsyncpa [#allocation5 + $0x1], 1 }

</bundles_post_ra>
